<compile_context>
chip_gen: v5e
topology: v5e:2x2
jax: 0.10.0
libtpu: 0.0.40
codegen_flags: <defaults>
</compile_context>

<pallas_src>
import jax
import jax.numpy as jnp
from jax import lax
from jax.experimental import pallas as pl
from jax.experimental.pallas import tpu as pltpu

EMB_DIM = 400          # embedding_dim in the module
CNN_OUT = 100          # Conv1d out_channels
N_CLASSES = 2          # Linear(100, 2)
H_PAD = 128            # CNN_OUT zero-padded to a full lane width
LANES = 128            # lane-dense output width / padded class dim
BATCH_SIZE_CONST = 32  # "batchSize" returned by the module (a constant there)


def classify_kernel(ids_ref, fused_ref, b1_ref, pool_ref, w2_ref, b2_ref,
                    slab_ref, summary_ref):
    """Whole batch in one step: (gather∘conv folded) -> relu -> mean -> linear -> CE."""
    TB = pool_ref.shape[0]
    L = ids_ref.shape[1] - 1            # last column of the id tile carries the target
    V = fused_ref.shape[0]              # vocab rows, zero-padded to a multiple of 128

    ids_all = ids_ref[...]              # (TB, L+1) int32
    tok = ids_all[:, :L]                # (TB, L) token ids
    tgt = ids_all[:, L:]                # (TB, 1) labels in {0, 1}

    # Embedding gather folded through Conv1d(400, 100, 1):
    #   onehot @ (table @ w1)  ==  (onehot @ table) @ w1   (exact for one-hot rows)
    onehot = (lax.broadcasted_iota(jnp.int32, (TB, L, V), 2)
              == tok[:, :, None]).astype(jnp.bfloat16)               # (TB, L, V)
    onehot = onehot.reshape(TB * L, V)                               # (TB*L, V)
    h = jnp.dot(onehot, fused_ref[...],
                preferred_element_type=jnp.float32) + b1_ref[...]    # (TB*L, 128)
    h = jnp.maximum(h, 0.0)                                          # ReLU
    # TODO(synk): nn.Dropout(p=0.4) in training mode is skipped (eval semantics).

    # torch.mean(convolved, dim=2): block-diagonal 1/L pooling matrix on the MXU.
    pooled = jnp.dot(pool_ref[...], h,
                     preferred_element_type=jnp.float32)             # (TB, 128)

    # Linear(100, 2), zero-padded to 128 lanes: columns >= 2 of r are exactly 0.
    r = jnp.dot(pooled, w2_ref[...],
                preferred_element_type=jnp.float32) + b2_ref[...]    # (TB, 128)

    l0 = r[:, 0:1]                                                   # (TB, 1)
    l1 = r[:, 1:2]                                                   # (TB, 1)

    # CrossEntropyLoss(reduction='none') over 2 classes: lse - logits[target]
    m = jnp.maximum(l0, l1)
    lse = m + jnp.log(jnp.exp(l0 - m) + jnp.exp(l1 - m))             # (TB, 1)
    picked = jnp.where(tgt == 1, l1, l0)                             # (TB, 1)
    loss = lse - picked                                              # (TB, 1)

    # prediction = where(logits[:,0] < logits[:,1], 1, 0); correctness flag
    pred = (l0 < l1).astype(jnp.int32)                               # (TB, 1)
    correct = (pred == tgt).astype(jnp.float32)                      # (TB, 1)

    # Per-example lane-dense slab: cols 0:2 logits, col 2 loss, col 3 correct.
    lane = lax.broadcasted_iota(jnp.int32, r.shape, 1)
    slab_ref[...] = (r
                     + jnp.where(lane == 2, loss, 0.0)
                     + jnp.where(lane == 3, correct, 0.0))

    # Fused epilogue: loss.sum() in lane 0, accuracy in lane 1 of the summary row.
    loss_sum = jnp.sum(loss)
    accuracy = jnp.sum(correct) * (1.0 / TB)
    lane1 = lax.broadcasted_iota(jnp.int32, (1, LANES), 1)
    summary_ref[...] = (jnp.where(lane1 == 0, loss_sum, 0.0)
                        + jnp.where(lane1 == 1, accuracy, 0.0))


def model_forward(input_words, targets, params):
    """input_words: (B, L) int32 token ids; targets: (B,) int32 labels in {0,1}."""
    B, L = input_words.shape
    table = params["emb_table"]                         # (Vpad, 400) f32
    w1, b1 = params["w1"], params["b1"]                 # (400,100), (1,100) f32
    w2, b2 = params["w2"], params["b2"]                 # (100,2),   (1,2)   f32

    # Fold the embedding table through the 1x1 conv once (tiny matmul), pad the
    # hidden dim to 128 lanes, and pre-cast the MXU operand to bf16 in the wrapper.
    fused = jnp.dot(table, w1)                                          # (Vpad, 100)
    fused = jnp.pad(fused, ((0, 0), (0, H_PAD - CNN_OUT))).astype(jnp.bfloat16)
    b1p = jnp.pad(b1, ((0, 0), (0, H_PAD - CNN_OUT)))                   # (1, 128)
    w2p = jnp.pad(w2, ((0, H_PAD - CNN_OUT), (0, LANES - N_CLASSES)))   # (128, 128)
    b2p = jnp.pad(b2, ((0, 0), (0, LANES - N_CLASSES)))                 # (1, 128)

    # Block-diagonal mean-pooling matrix: pooled = pool @ h, pool[b, b*L + l] = 1/L.
    pool = jnp.repeat(jnp.eye(B, dtype=jnp.float32), L, axis=1) * (1.0 / L)  # (B, B*L)

    # Targets ride along as one extra int32 column of the id tile (one fewer DMA).
    ids2 = jnp.concatenate(
        [input_words.astype(jnp.int32), targets.reshape(B, 1).astype(jnp.int32)],
        axis=1)                                                         # (B, L+1)

    slab, summary = pl.pallas_call(
        classify_kernel,
        out_shape=(jax.ShapeDtypeStruct((B, LANES), jnp.float32),
                   jax.ShapeDtypeStruct((1, LANES), jnp.float32)),
        grid_spec=pltpu.PrefetchScalarGridSpec(
            num_scalar_prefetch=0,
            grid=(1,),                                        # whole batch in one step
            in_specs=[
                pl.BlockSpec((B, L + 1), lambda i: (0, 0)),       # ids + target column
                pl.BlockSpec(fused.shape, lambda i: (0, 0)),      # folded table (bf16)
                pl.BlockSpec((1, H_PAD), lambda i: (0, 0)),       # conv bias (padded)
                pl.BlockSpec((B, B * L), lambda i: (0, 0)),       # pooling matrix
                pl.BlockSpec((H_PAD, LANES), lambda i: (0, 0)),   # padded head weight
                pl.BlockSpec((1, LANES), lambda i: (0, 0)),       # padded head bias
            ],
            out_specs=[
                pl.BlockSpec((B, LANES), lambda i: (0, 0)),       # per-example slab
                pl.BlockSpec((1, LANES), lambda i: (0, 0)),       # fused loss/acc row
            ],
        ),
        compiler_params=pltpu.CompilerParams(
            dimension_semantics=("parallel",),
            vmem_limit_bytes=32 * 1024 * 1024,        # safe on v5e/v6e/v7x (<1 MiB used)
        ),
    )(ids2, fused, b1p, pool, w2p, b2p)

    del slab  # per-example logits/loss/correct, kept only for inspection/debugging
    loss_sum = summary[0, 0]
    accuracy = summary[0, 1]
    return loss_sum, BATCH_SIZE_CONST, accuracy


def make_params(key, vocab):
    k_emb, k_w1, k_b1, k_w2, k_b2 = jax.random.split(key, 5)
    vpad = ((vocab + LANES - 1) // LANES) * LANES     # pad vocab rows to 128-multiple
    table = 0.1 * jax.random.normal(k_emb, (vocab, EMB_DIM), jnp.float32)
    table = jnp.pad(table, ((0, vpad - vocab), (0, 0)))
    return {
        # words_embeddings: (len(itos)+3, 400), row-padded to a 128 multiple
        "emb_table": table,
        # cnn: Conv1d(400, 100, 1) -> weight (100, 400, 1); stored transposed (400, 100)
        "w1": 0.05 * jax.random.normal(k_w1, (EMB_DIM, CNN_OUT), jnp.float32),
        "b1": 0.05 * jax.random.normal(k_b1, (1, CNN_OUT), jnp.float32),
        # output: Linear(100, 2) -> weight (2, 100); stored transposed (100, 2)
        "w2": 0.05 * jax.random.normal(k_w2, (CNN_OUT, N_CLASSES), jnp.float32),
        "b2": 0.05 * jax.random.normal(k_b2, (1, N_CLASSES), jnp.float32),
    }


if __name__ == "__main__":
    key = jax.random.PRNGKey(0)
    k_params, k_words, k_tgt = jax.random.split(key, 3)

    VOCAB = 53            # small synthetic vocab (len(itos) + 3)
    B, L = 32, 8          # batch of padded token sequences (batchSize = 32)

    params = make_params(k_params, VOCAB)
    input_words = jax.random.randint(k_words, (B, L), 0, VOCAB, dtype=jnp.int32)
    targets = jax.random.randint(k_tgt, (B,), 0, N_CLASSES, dtype=jnp.int32)

    fwd = jax.jit(model_forward)
    loss_sum, bsz, acc = fwd(input_words, targets, params)
    jax.block_until_ready((loss_sum, acc))
    print("KERNEL_OK")
</pallas_src>

<mosaic_0001>
module attributes {stable_mosaic.version = 11 : i64} {
  func.func @classify_kernel(%arg0: i32, %arg1: memref<32x9xi32, #tpu.memory_space<vmem>>, %arg2: memref<128x128xbf16, #tpu.memory_space<vmem>>, %arg3: memref<1x128xf32, #tpu.memory_space<vmem>>, %arg4: memref<32x256xf32, #tpu.memory_space<vmem>>, %arg5: memref<128x128xf32, #tpu.memory_space<vmem>>, %arg6: memref<1x128xf32, #tpu.memory_space<vmem>>, %arg7: memref<32x128xf32, #tpu.memory_space<vmem>>, %arg8: memref<1x128xf32, #tpu.memory_space<vmem>>) attributes {dimension_semantics = [#tpu.dimension_semantics<parallel>], iteration_bounds = array<i64: 1>, scalar_prefetch = 0 : i64, scratch_operands = 0 : i64, tpu.core_type = #tpu.core_type<tc>, window_params = [{pipeline_mode = #tpu.pipeline_mode<synchronous>, transform_indices = @transform_0, window_bounds = array<i64: 32, 9>}, {pipeline_mode = #tpu.pipeline_mode<synchronous>, transform_indices = @transform_1, window_bounds = array<i64: 128, 128>}, {pipeline_mode = #tpu.pipeline_mode<synchronous>, transform_indices = @transform_2, window_bounds = array<i64: 1, 128>}, {pipeline_mode = #tpu.pipeline_mode<synchronous>, transform_indices = @transform_3, window_bounds = array<i64: 32, 256>}, {pipeline_mode = #tpu.pipeline_mode<synchronous>, transform_indices = @transform_4, window_bounds = array<i64: 128, 128>}, {pipeline_mode = #tpu.pipeline_mode<synchronous>, transform_indices = @transform_5, window_bounds = array<i64: 1, 128>}, {pipeline_mode = #tpu.pipeline_mode<synchronous>, transform_indices = @transform_6, window_bounds = array<i64: 32, 128>}, {pipeline_mode = #tpu.pipeline_mode<synchronous>, transform_indices = @transform_7, window_bounds = array<i64: 1, 128>}]} {
    %c0 = arith.constant 0 : index
    %c0_0 = arith.constant 0 : index
    %0 = vector.load %arg1[%c0, %c0_0] : memref<32x9xi32, #tpu.memory_space<vmem>>, vector<32x9xi32>
    %1 = vector.extract_strided_slice %0 {offsets = [0, 0], sizes = [32, 8], strides = [1, 1]} : vector<32x9xi32> to vector<32x8xi32>
    %2 = vector.extract_strided_slice %0 {offsets = [0, 8], sizes = [32, 1], strides = [1, 1]} : vector<32x9xi32> to vector<32x1xi32>
    %3 = tpu.iota {dimensions = array<i32: 2>} : vector<32x8x128xi32>
    %4 = vector.shape_cast %1 : vector<32x8xi32> to vector<32x8x1xi32>
    %5 = vector.broadcast %4 : vector<32x8x1xi32> to vector<32x8x128xi32>
    %6 = arith.cmpi eq, %3, %5 : vector<32x8x128xi32>
    %7 = arith.extui %6 : vector<32x8x128xi1> to vector<32x8x128xi32>
    %8 = arith.sitofp %7 : vector<32x8x128xi32> to vector<32x8x128xf32>
    %9 = arith.truncf %8 : vector<32x8x128xf32> to vector<32x8x128xbf16>
    %10 = vector.shape_cast %9 : vector<32x8x128xbf16> to vector<256x128xbf16>
    %c0_1 = arith.constant 0 : index
    %c0_2 = arith.constant 0 : index
    %11 = vector.load %arg2[%c0_1, %c0_2] : memref<128x128xbf16, #tpu.memory_space<vmem>>, vector<128x128xbf16>
    %cst = arith.constant dense<0.000000e+00> : vector<256x128xf32>
    %12 = tpu.matmul %10, %11, %cst {dimension_numbers = #tpu.dot_dimension_numbers<[1], [0], [0], [1], [0, 0, 1, 1], [], []>} : vector<256x128xbf16>, vector<128x128xbf16>, vector<256x128xf32> -> vector<256x128xf32>
    %c0_3 = arith.constant 0 : index
    %c0_4 = arith.constant 0 : index
    %13 = vector.load %arg3[%c0_3, %c0_4] : memref<1x128xf32, #tpu.memory_space<vmem>>, vector<1x128xf32>
    %14 = vector.broadcast %13 : vector<1x128xf32> to vector<256x128xf32>
    %15 = arith.addf %12, %14 : vector<256x128xf32>
    %cst_5 = arith.constant 0.000000e+00 : f32
    %16 = vector.broadcast %cst_5 : f32 to vector<256x128xf32>
    %17 = arith.maximumf %15, %16 : vector<256x128xf32>
    %c0_6 = arith.constant 0 : index
    %c0_7 = arith.constant 0 : index
    %18 = vector.load %arg4[%c0_6, %c0_7] : memref<32x256xf32, #tpu.memory_space<vmem>>, vector<32x256xf32>
    %cst_8 = arith.constant dense<0.000000e+00> : vector<32x128xf32>
    %19 = tpu.matmul %18, %17, %cst_8 {dimension_numbers = #tpu.dot_dimension_numbers<[1], [0], [0], [1], [0, 0, 1, 1], [], []>} : vector<32x256xf32>, vector<256x128xf32>, vector<32x128xf32> -> vector<32x128xf32>
    %c0_9 = arith.constant 0 : index
    %c0_10 = arith.constant 0 : index
    %20 = vector.load %arg5[%c0_9, %c0_10] : memref<128x128xf32, #tpu.memory_space<vmem>>, vector<128x128xf32>
    %cst_11 = arith.constant dense<0.000000e+00> : vector<32x128xf32>
    %21 = tpu.matmul %19, %20, %cst_11 {dimension_numbers = #tpu.dot_dimension_numbers<[1], [0], [0], [1], [0, 0, 1, 1], [], []>} : vector<32x128xf32>, vector<128x128xf32>, vector<32x128xf32> -> vector<32x128xf32>
    %c0_12 = arith.constant 0 : index
    %c0_13 = arith.constant 0 : index
    %22 = vector.load %arg6[%c0_12, %c0_13] : memref<1x128xf32, #tpu.memory_space<vmem>>, vector<1x128xf32>
    %23 = vector.broadcast %22 : vector<1x128xf32> to vector<32x128xf32>
    %24 = arith.addf %21, %23 : vector<32x128xf32>
    %25 = vector.extract_strided_slice %24 {offsets = [0, 0], sizes = [32, 1], strides = [1, 1]} : vector<32x128xf32> to vector<32x1xf32>
    %26 = vector.extract_strided_slice %24 {offsets = [0, 1], sizes = [32, 1], strides = [1, 1]} : vector<32x128xf32> to vector<32x1xf32>
    %27 = arith.maximumf %25, %26 : vector<32x1xf32>
    %28 = arith.subf %25, %27 : vector<32x1xf32>
    %29 = math.exp %28 : vector<32x1xf32>
    %30 = arith.subf %26, %27 : vector<32x1xf32>
    %31 = math.exp %30 : vector<32x1xf32>
    %32 = arith.addf %29, %31 : vector<32x1xf32>
    %33 = math.log %32 : vector<32x1xf32>
    %34 = arith.addf %27, %33 : vector<32x1xf32>
    %c1_i32 = arith.constant 1 : i32
    %35 = vector.broadcast %c1_i32 : i32 to vector<32x1xi32>
    %36 = arith.cmpi eq, %2, %35 : vector<32x1xi32>
    %37 = arith.select %36, %26, %25 : vector<32x1xi1>, vector<32x1xf32>
    %38 = arith.subf %34, %37 : vector<32x1xf32>
    %39 = arith.cmpf olt, %25, %26 : vector<32x1xf32>
    %40 = arith.extui %39 : vector<32x1xi1> to vector<32x1xi32>
    %41 = arith.cmpi eq, %40, %2 : vector<32x1xi32>
    %42 = arith.extui %41 : vector<32x1xi1> to vector<32x1xi32>
    %43 = arith.sitofp %42 : vector<32x1xi32> to vector<32x1xf32>
    %44 = tpu.iota {dimensions = array<i32: 1>} : vector<32x128xi32>
    %c2_i32 = arith.constant 2 : i32
    %45 = vector.broadcast %c2_i32 : i32 to vector<32x128xi32>
    %46 = arith.cmpi eq, %44, %45 : vector<32x128xi32>
    %cst_14 = arith.constant 0.000000e+00 : f32
    %47 = vector.shape_cast %38 : vector<32x1xf32> to vector<32x1xf32>
    %48 = vector.broadcast %47 : vector<32x1xf32> to vector<32x128xf32>
    %49 = vector.broadcast %cst_14 : f32 to vector<32x128xf32>
    %50 = arith.select %46, %48, %49 : vector<32x128xi1>, vector<32x128xf32>
    %51 = arith.addf %24, %50 : vector<32x128xf32>
    %c3_i32 = arith.constant 3 : i32
    %52 = vector.broadcast %c3_i32 : i32 to vector<32x128xi32>
    %53 = arith.cmpi eq, %44, %52 : vector<32x128xi32>
    %cst_15 = arith.constant 0.000000e+00 : f32
    %54 = vector.shape_cast %43 : vector<32x1xf32> to vector<32x1xf32>
    %55 = vector.broadcast %54 : vector<32x1xf32> to vector<32x128xf32>
    %56 = vector.broadcast %cst_15 : f32 to vector<32x128xf32>
    %57 = arith.select %53, %55, %56 : vector<32x128xi1>, vector<32x128xf32>
    %58 = arith.addf %51, %57 : vector<32x128xf32>
    %c0_16 = arith.constant 0 : index
    %c0_17 = arith.constant 0 : index
    %59 = vector.load %arg7[%c0_16, %c0_17] : memref<32x128xf32, #tpu.memory_space<vmem>>, vector<32x128xf32>
    tpu.vector_store %arg7[%c0_16, %c0_17], %58 {strides = array<i32>} : memref<32x128xf32, #tpu.memory_space<vmem>>, vector<32x128xf32>,
    %60 = vector.shape_cast %38 : vector<32x1xf32> to vector<1x32x1xf32>
    %cst_18 = arith.constant dense<0.000000e+00> : vector<1xf32>
    %61 = vector.multi_reduction <add>, %60, %cst_18 [1, 2] : vector<1x32x1xf32> to vector<1xf32>
    %62 = vector.shape_cast %61 : vector<1xf32> to vector<1x1x1xf32>
    %63 = vector.extract %62[0, 0, 0] : f32 from vector<1x1x1xf32>
    %64 = vector.shape_cast %43 : vector<32x1xf32> to vector<1x32x1xf32>
    %cst_19 = arith.constant dense<0.000000e+00> : vector<1xf32>
    %65 = vector.multi_reduction <add>, %64, %cst_19 [1, 2] : vector<1x32x1xf32> to vector<1xf32>
    %66 = vector.shape_cast %65 : vector<1xf32> to vector<1x1x1xf32>
    %67 = vector.extract %66[0, 0, 0] : f32 from vector<1x1x1xf32>
    %cst_20 = arith.constant 3.125000e-02 : f32
    %68 = arith.mulf %67, %cst_20 : f32
    %69 = tpu.iota {dimensions = array<i32: 1>} : vector<1x128xi32>
    %c0_i32 = arith.constant 0 : i32
    %70 = vector.broadcast %c0_i32 : i32 to vector<1x128xi32>
    %71 = arith.cmpi eq, %69, %70 : vector<1x128xi32>
    %cst_21 = arith.constant 0.000000e+00 : f32
    %72 = vector.broadcast %63 : f32 to vector<1x128xf32>
    %73 = vector.broadcast %cst_21 : f32 to vector<1x128xf32>
    %74 = arith.select %71, %72, %73 : vector<1x128xi1>, vector<1x128xf32>
    %c1_i32_22 = arith.constant 1 : i32
    %75 = vector.broadcast %c1_i32_22 : i32 to vector<1x128xi32>
    %76 = arith.cmpi eq, %69, %75 : vector<1x128xi32>
    %cst_23 = arith.constant 0.000000e+00 : f32
    %77 = vector.broadcast %68 : f32 to vector<1x128xf32>
    %78 = vector.broadcast %cst_23 : f32 to vector<1x128xf32>
    %79 = arith.select %76, %77, %78 : vector<1x128xi1>, vector<1x128xf32>
    %80 = arith.addf %74, %79 : vector<1x128xf32>
    %c0_24 = arith.constant 0 : index
    %c0_25 = arith.constant 0 : index
    %81 = vector.load %arg8[%c0_24, %c0_25] : memref<1x128xf32, #tpu.memory_space<vmem>>, vector<1x128xf32>
    tpu.vector_store %arg8[%c0_24, %c0_25], %80 {strides = array<i32>} : memref<1x128xf32, #tpu.memory_space<vmem>>, vector<1x128xf32>,
    return
  }
  func.func @transform_0(%arg0: i32) -> (i32, i32) {
    %c0_i32 = arith.constant 0 : i32
    %c0_i32_0 = arith.constant 0 : i32
    %c0_i32_1 = arith.constant 0 : i32
    return %c0_i32, %c0_i32_0 : i32, i32
  }
  func.func @transform_1(%arg0: i32) -> (i32, i32) {
    %c0_i32 = arith.constant 0 : i32
    %c0_i32_0 = arith.constant 0 : i32
    %c0_i32_1 = arith.constant 0 : i32
    return %c0_i32, %c0_i32_0 : i32, i32
  }
  func.func @transform_2(%arg0: i32) -> (i32, i32) {
    %c0_i32 = arith.constant 0 : i32
    %c0_i32_0 = arith.constant 0 : i32
    %c0_i32_1 = arith.constant 0 : i32
    return %c0_i32, %c0_i32_0 : i32, i32
  }
  func.func @transform_3(%arg0: i32) -> (i32, i32) {
    %c0_i32 = arith.constant 0 : i32
    %c0_i32_0 = arith.constant 0 : i32
    %c0_i32_1 = arith.constant 0 : i32
    return %c0_i32, %c0_i32_0 : i32, i32
  }
  func.func @transform_4(%arg0: i32) -> (i32, i32) {
    %c0_i32 = arith.constant 0 : i32
    %c0_i32_0 = arith.constant 0 : i32
    %c0_i32_1 = arith.constant 0 : i32
    return %c0_i32, %c0_i32_0 : i32, i32
  }
  func.func @transform_5(%arg0: i32) -> (i32, i32) {
    %c0_i32 = arith.constant 0 : i32
    %c0_i32_0 = arith.constant 0 : i32
    %c0_i32_1 = arith.constant 0 : i32
    return %c0_i32, %c0_i32_0 : i32, i32
  }
  func.func @transform_6(%arg0: i32) -> (i32, i32) {
    %c0_i32 = arith.constant 0 : i32
    %c0_i32_0 = arith.constant 0 : i32
    %c0_i32_1 = arith.constant 0 : i32
    return %c0_i32, %c0_i32_0 : i32, i32
  }
  func.func @transform_7(%arg0: i32) -> (i32, i32) {
    %c0_i32 = arith.constant 0 : i32
    %c0_i32_0 = arith.constant 0 : i32
    %c0_i32_1 = arith.constant 0 : i32
    return %c0_i32, %c0_i32_0 : i32, i32
  }
}

</mosaic_0001>

<bundles_post_ra>
// kernel: model_forward.1
= control target key start
LH: loop header
LB: loop body
LE: loop exit
PB: predicated region body
PF: predicated region fallthrough
CT: control target
= control target key end

     0   :  { %v30_v0 = vlaneseq  ;;  %s1698_s0 = inlined_call_operand.vmem [shape: s32[32,9], index: 0, kind: input, shape index: {}]   ;;  %s1699_s1 = inlined_call_operand.vmem [shape: bf16[128,128], index: 1, kind: input, shape index: {}]   ;;  %s1700_s2 = inlined_call_operand.vmem [shape: f32[1,128], index: 2, kind: input, shape index: {}]   ;;  %s1701_s3 = inlined_call_operand.vmem [shape: f32[32,256], index: 3, kind: input, shape index: {}]   ;;  %s1702_s4 = inlined_call_operand.vmem [shape: f32[128,128], index: 4, kind: input, shape index: {}]   ;;  %s1703_s5 = inlined_call_operand.vmem [shape: f32[1,128], index: 5, kind: input, shape index: {}]   ;;  %s1704_s6 = inlined_call_operand.hbm [shape: f32[32,128], index: 6, kind: output, shape index: {0}]   ;;  %s1705_s7 = inlined_call_operand.vmem [shape: f32[1,128], index: 7, kind: output, shape index: {1}]  }
   0x2   :  { %v34_v1 = vshrl.u32 %v30_v0, 7 }
   0x3   :  { %13 = vsyncpa [#allocation3], 0  ;;  %v29_v2 = vld [vmem:[%s1698_s0 + $0x18] sm:$0xff]  ;;  %v26_v3 = vld [vmem:[%s1698_s0] sm:$0xff]  ;;  %v1353_v48 = vand.u32 127, %v30_v0  ;;  %v1266_v52 = vmov 0.0  }
   0x4   :  { %1197 = vset.pattern.permute.xlu2 %v34_v1  ;;  %1196 = vset.pattern.permute.xlu1 %v34_v1  ;;  %v200_v4 = vperm.slane %v29_v2, 0  ;;  %v46_v5 = vperm.slane %v26_v3, 2  ;;  %v32_v6 = vperm.slane %v26_v3, 0  ;;  %v207_v7 = vperm.slane %v29_v2, 1  ;;  %v27_v13 = vld [vmem:[%s1698_s0 + $0x8] sm:$0xff]  ;;  %v28_v23 = vld [vmem:[%s1698_s0 + $0x10] sm:$0xff] }
   0x5   :  { %1195 = vset.pattern.permute.xlu0 %v34_v1  ;;  %v53_v8 = vperm.slane %v26_v3, 3  ;;  %v39_v9 = vperm.slane %v26_v3, 1  ;;  %v221_v10 = vperm.slane %v29_v2, 3  ;;  %v60_v11 = vperm.slane %v26_v3, 4  ;;  %v1157_v33 = vld [vmem:[%s1699_s1 + $0x38] sm:$0xff]  ;;  %v1156_v37 = vld [vmem:[%s1699_s1 + $0x30] sm:$0xff] }
   0x6   :  { %v214_v12 = vperm.slane %v29_v2, 2  ;;  %v116_v14 = vperm.slane %v27_v13, 4  ;;  %v123_v15 = vperm.slane %v27_v13, 5  ;;  %v67_v16 = vperm.slane %v26_v3, 5  ;;  %548 = vmatpush.bf16.msra.mxu0 %v1157_v33  ;;  %1160 = vmatpush.bf16.msra.mxu3 %v1157_v33  ;;  %v1155_v38 = vld [vmem:[%s1699_s1 + $0x28] sm:$0xff]  ;;  %v1154_v41 = vld [vmem:[%s1699_s1 + $0x20] sm:$0xff] }
   0x7   :  { %v235_v17 = vperm.slane %v29_v2, 5  ;;  %v74_v18 = vperm.slane %v26_v3, 6  ;;  %v228_v19 = vperm.slane %v29_v2, 4  ;;  %v130_v20 = vperm.slane %v27_v13, 6  ;;  %1158 = vmatpush.bf16.msra.mxu1 %v1157_v33  ;;  %1159 = vmatpush.bf16.msra.mxu2 %v1157_v33  ;;  %v1153_v42 = vld [vmem:[%s1699_s1 + $0x18] sm:$0xff]  ;;  %v1152_v43 = vld [vmem:[%s1699_s1 + $0x10] sm:$0xff] }
   0x8   :  { %v137_v21 = vperm.slane %v27_v13, 7  ;;  %v81_v22 = vperm.slane %v26_v3, 7  ;;  %v179_v24 = vperm.slane %v28_v23, 5  ;;  %v242_v25 = vperm.slane %v29_v2, 6  ;;  %v1151_v44 = vld [vmem:[%s1699_s1 + $0x8] sm:$0xff]  ;;  %v1150_v45 = vld [vmem:[%s1699_s1] sm:$0xff] }
   0x9   :  { %v172_v26 = vperm.slane %v28_v23, 4  ;;  %v88_v27 = vperm.slane %v27_v13, 0  ;;  %v95_v28 = vperm.slane %v27_v13, 1  ;;  %v249_v29 = vperm.slane %v29_v2, 7  ;;  %s1270_s25 = smov 8   ;;  %s1272_s28 = smov 120  }
   0xa   :  { %v151_v30 = vperm.slane %v28_v23, 1  ;;  %v186_v31 = vperm.slane %v28_v23, 6  ;;  %v144_v32 = vperm.slane %v28_v23, 0  ;;  %v102_v34 = vperm.slane %v27_v13, 2  ;;  %549 = vmatpush.bf16.msra.mxu0 %v1156_v37  ;;  %1163 = vmatpush.bf16.msra.mxu3 %v1156_v37  ;;  %s1066_s15 = sshll.u32 %s1704_s6, 4  ;;  %s1274_s16 = smov 128   ;;  %s1067_s15 = int_to_ptr.hbm [resolvable:$true] %s1066_s15 }
   0xb   :  { %v109_v35 = vperm.slane %v27_v13, 3  ;;  %v193_v36 = vperm.slane %v28_v23, 7  ;;  %1161 = vmatpush.bf16.msra.mxu1 %v1156_v37  ;;  %1162 = vmatpush.bf16.msra.mxu2 %v1156_v37  ;;  %v165_v39 = vperm.slane %v28_v23, 3  ;;  %v158_v40 = vperm.slane %v28_v23, 2 }
   0xc   :  { %205 = vperm.xlu1 %1196, %v200_v4   ;;  %51 = vperm.xlu2 %1197, %v46_v5  }
   0xd   :  { %37 = vperm.xlu0 %1195, %v32_v6  }
   0xe   :  { %550 = vmatpush.bf16.msra.mxu0 %v1155_v38  ;;  %1166 = vmatpush.bf16.msra.mxu3 %v1155_v38 }
   0xf   :  { %1164 = vmatpush.bf16.msra.mxu1 %v1155_v38  ;;  %1165 = vmatpush.bf16.msra.mxu2 %v1155_v38 }
  0x12   :  { %551 = vmatpush.bf16.msra.mxu0 %v1154_v41  ;;  %1169 = vmatpush.bf16.msra.mxu3 %v1154_v41 }
  0x13   :  { %1167 = vmatpush.bf16.msra.mxu1 %v1154_v41  ;;  %1168 = vmatpush.bf16.msra.mxu2 %v1154_v41 }
  0x14   :  { %212 = vperm.xlu1 %1196, %v207_v7   ;;  %58 = vperm.xlu2 %1197, %v53_v8  }
  0x15   :  { %44 = vperm.xlu0 %1195, %v39_v9  }
  0x16   :  { %552 = vmatpush.bf16.msra.mxu0 %v1153_v42  ;;  %1172 = vmatpush.bf16.msra.mxu3 %v1153_v42 }
  0x17   :  { %1170 = vmatpush.bf16.msra.mxu1 %v1153_v42  ;;  %1171 = vmatpush.bf16.msra.mxu2 %v1153_v42 }
  0x1a   :  { %553 = vmatpush.bf16.msra.mxu0 %v1152_v43  ;;  %1175 = vmatpush.bf16.msra.mxu3 %v1152_v43 }
  0x1b   :  { %1173 = vmatpush.bf16.msra.mxu1 %v1152_v43  ;;  %1174 = vmatpush.bf16.msra.mxu2 %v1152_v43 }
  0x1c   :  { %226 = vperm.xlu1 %1196, %v221_v10   ;;  %65 = vperm.xlu2 %1197, %v60_v11  }
  0x1d   :  { %219 = vperm.xlu0 %1195, %v214_v12  }
  0x1e   :  { %554 = vmatpush.bf16.msra.mxu0 %v1151_v44  ;;  %1178 = vmatpush.bf16.msra.mxu3 %v1151_v44 }
  0x1f   :  { %1176 = vmatpush.bf16.msra.mxu1 %v1151_v44  ;;  %1177 = vmatpush.bf16.msra.mxu2 %v1151_v44 }
  0x22   :  { %555 = vmatpush.bf16.msra.mxu0 %v1150_v45  ;;  %1181 = vmatpush.bf16.msra.mxu3 %v1150_v45 }
  0x23   :  { %1179 = vmatpush.bf16.msra.mxu1 %v1150_v45  ;;  %1180 = vmatpush.bf16.msra.mxu2 %v1150_v45 }
  0x24   :  { %121 = vperm.xlu1 %1196, %v116_v14   ;;  %128 = vperm.xlu2 %1197, %v123_v15  }
  0x25   :  { %72 = vperm.xlu0 %1195, %v67_v16  }
  0x2c   :  { %240 = vperm.xlu1 %1196, %v235_v17   ;;  %79 = vperm.xlu2 %1197, %v74_v18  }
  0x2d   :  { %233 = vperm.xlu0 %1195, %v228_v19  }
  0x34   :  { %135 = vperm.xlu1 %1196, %v130_v20   ;;  %142 = vperm.xlu2 %1197, %v137_v21  }
  0x35   :  { %86 = vperm.xlu0 %1195, %v81_v22  }
  0x3c   :  { %184 = vperm.xlu1 %1196, %v179_v24   ;;  %247 = vperm.xlu2 %1197, %v242_v25  }
  0x3d   :  { %177 = vperm.xlu0 %1195, %v172_v26  }
  0x44   :  { %93 = vperm.xlu1 %1196, %v88_v27   ;;  %100 = vperm.xlu2 %1197, %v95_v28  }
  0x45   :  { %254 = vperm.xlu0 %1195, %v249_v29  }
  0x4c   :  { %156 = vperm.xlu1 %1196, %v151_v30   ;;  %191 = vperm.xlu2 %1197, %v186_v31  }
  0x4d   :  { %149 = vperm.xlu0 %1195, %v144_v32  }
  0x54   :  { %107 = vperm.xlu1 %1196, %v102_v34   ;;  %114 = vperm.xlu2 %1197, %v109_v35  }
  0x55   :  { %198 = vperm.xlu0 %1195, %v193_v36  }
  0x5c   :  { %170 = vperm.xlu1 %1196, %v165_v39  }
  0x5d   :  { %163 = vperm.xlu0 %1195, %v158_v40  }
  0x66   :  { %v52_v46 = vpop.permute.xlu2 %51 }
  0x67   :  { %vm258_vm5 = vcmp.eq.s32.totalorder %v1353_v48, %v52_v46 }
  0x68   :  { %v1084_v10 = vsel %vm258_vm5, 1.0, %v1266_v52 }
  0x69   :  { %v354_v16 = vpack.c.bf16 %v1084_v10, %v1084_v10 }
  0x6b   :  { %v438_v25 = vunpack.c.l.b16 %v354_v16 }
  0x6e   :  { %v59_v47 = vpop.permute.xlu2 %58 }
  0x6f   :  { %vm259_vm6 = vcmp.eq.s32.totalorder %v1353_v48, %v59_v47 }
  0x70   :  { %v1085_v11 = vsel %vm259_vm6, 1.0, %v1266_v52 }
  0x71   :  { %v355_v17 = vpack.c.bf16 %v1085_v11, %v1085_v11 }
  0x73   :  { %v439_v26 = vunpack.c.l.b16 %v355_v17 }
  0x75   :  { %v469_v33 = vpack.c.b16 %v439_v26, %v438_v25 }
  0x76   :  { %v1356_v51 = vpop.permute.xlu2 %65 }
  0x77   :  { %vm260_vm14 = vcmp.eq.s32.totalorder %v1353_v48, %v1356_v51 }
  0x78   :  { %v1086_v39 = vsel %vm260_vm14, 1.0, %v1266_v52 }
  0x79   :  { %v356_v46 = vpack.c.bf16 %v1086_v39, %v1086_v39 }
  0x7e   :  { %v206_v49 = vpop.permute.xlu1 %205  ;;  %v129_v63 = vpop.permute.xlu2 %128 }
  0x7f   :  { %vm280_vm0 = vcmp.eq.s32.totalorder %v1353_v48, %v206_v49  ;;  %v38_v50 = vpop.permute.xlu0 %37  ;;  %vm269_vm8 = vcmp.eq.s32.totalorder %v1353_v48, %v129_v63 }
  0x80   :  { %v1106_v53 = vsel %vm280_vm0, 1.0, %v1266_v52  ;;  %vm256_vm1 = vcmp.eq.s32.totalorder %v1353_v48, %v38_v50  ;;  %v1095_v12 = vsel %vm269_vm8, 1.0, %v1266_v52 }
  0x81   :  { %v376_v54 = vpack.c.bf16 %v1106_v53, %v1106_v53  ;;  %v1082_v55 = vsel %vm256_vm1, 1.0, %v1266_v52  ;;  %v365_v19 = vpack.c.bf16 %v1095_v12, %v1095_v12 }
  0x82   :  { %v352_v58 = vpack.c.bf16 %v1082_v55, %v1082_v55 }
  0x83   :  { %v460_v60 = vunpack.c.l.b16 %v376_v54  ;;  %v449_v27 = vunpack.c.l.b16 %v365_v19 }
  0x84   :  { %v436_v2 = vunpack.c.l.b16 %v352_v58 }
  0x86   :  { %v213_v56 = vpop.permute.xlu1 %212  ;;  %v1375_v13 = vpop.permute.xlu2 %79 }
  0x87   :  { %vm281_vm2 = vcmp.eq.s32.totalorder %v1353_v48, %v213_v56  ;;  %v45_v57 = vpop.permute.xlu0 %44 }
  0x88   :  { %v1107_v59 = vsel %vm281_vm2, 1.0, %v1266_v52  ;;  %vm257_vm3 = vcmp.eq.s32.totalorder %v1353_v48, %v45_v57  ;;  %v440_v57 = vunpack.c.l.b16 %v356_v46 }
  0x89   :  { %v377_v61 = vpack.c.bf16 %v1107_v59, %v1107_v59  ;;  %v1083_v62 = vsel %vm257_vm3, 1.0, %v1266_v52  ;;  %vm262_vm3 = vcmp.eq.s32.totalorder %v1353_v48, %v1375_v13 }
  0x8a   :  { %v353_v0 = vpack.c.bf16 %v1083_v62, %v1083_v62 }
  0x8b   :  { %v461_v1 = vunpack.c.l.b16 %v377_v61 }
  0x8c   :  { %v437_v3 = vunpack.c.l.b16 %v353_v0 }
  0x8d   :  { %v480_v4 = vpack.c.b16 %v461_v1, %v460_v60 }
  0x8e   :  { %v227_v5 = vpop.permute.xlu1 %226  ;;  %v468_v6 = vpack.c.b16 %v437_v3, %v436_v2  ;;  %v143_v31 = vpop.permute.xlu2 %142 }
  0x8f   :  { %vm283_vm4 = vcmp.eq.s32.totalorder %v1353_v48, %v227_v5  ;;  %v220_v7 = vpop.permute.xlu0 %219  ;;  %616 = vmatmul.bf16.vlgmr.msra.gmra.mxu3 %v480_v4  ;;  %vm271_vm13 = vcmp.eq.s32.totalorder %v1353_v48, %v143_v31 }
  0x90   :  { %vm282_vm7 = vcmp.eq.s32.totalorder %v1353_v48, %v220_v7  ;;  %556 = vmatmul.bf16.vlgmr.msra.gmra.mxu0 %v468_v6  ;;  %v1109_v8 = vsel %vm283_vm4, 1.0, %v1266_v52  ;;  %v1097_v38 = vsel %vm271_vm13, 1.0, %v1266_v52  ;;  %v1088_v6 = vsel %vm262_vm3, 1.0, %v1266_v52 }
  0x91   :  { %v1108_v9 = vsel %vm282_vm7, 1.0, %v1266_v52  ;;  %v379_v14 = vpack.c.bf16 %v1109_v8, %v1109_v8  ;;  %v367_v44 = vpack.c.bf16 %v1097_v38, %v1097_v38 }
  0x92   :  { %v378_v15 = vpack.c.bf16 %v1108_v9, %v1108_v9 }
  0x93   :  { %v463_v22 = vunpack.c.l.b16 %v379_v14  ;;  %v451_v54 = vunpack.c.l.b16 %v367_v44  ;;  %v358_v14 = vpack.c.bf16 %v1088_v6, %v1088_v6 }
  0x94   :  { %v462_v23 = vunpack.c.l.b16 %v378_v15 }
  0x96   :  { %v122_v18 = vpop.permute.xlu1 %121  ;;  %v481_v30 = vpack.c.b16 %v463_v22, %v462_v23  ;;  %v248_v55 = vpop.permute.xlu2 %247 }
  0x97   :  { %vm268_vm9 = vcmp.eq.s32.totalorder %v1353_v48, %v122_v18  ;;  %v73_v20 = vpop.permute.xlu0 %72  ;;  %vm286_vm4 = vcmp.eq.s32.totalorder %v1353_v48, %v248_v55  ;;  %v442_v18 = vunpack.c.l.b16 %v358_v14 }
  0x98   :  { %v1094_v21 = vsel %vm268_vm9, 1.0, %v1266_v52  ;;  %vm261_vm11 = vcmp.eq.s32.totalorder %v1353_v48, %v73_v20  ;;  %v1112_v7 = vsel %vm286_vm4, 1.0, %v1266_v52 }
  0x99   :  { %v364_v24 = vpack.c.bf16 %v1094_v21, %v1094_v21  ;;  %v1087_v37 = vsel %vm261_vm11, 1.0, %v1266_v52  ;;  %v382_v15 = vpack.c.bf16 %v1112_v7, %v1112_v7 }
  0x9a   :  { %v357_v42 = vpack.c.bf16 %v1087_v37, %v1087_v37 }
  0x9b   :  { %v448_v28 = vunpack.c.l.b16 %v364_v24  ;;  %v466_v19 = vunpack.c.l.b16 %v382_v15 }
  0x9c   :  { %v441_v53 = vunpack.c.l.b16 %v357_v42 }
  0x9d   :  { %v474_v29 = vpack.c.b16 %v449_v27, %v448_v28 }
  0x9e   :  { %v241_v32 = vpop.permute.xlu1 %240  ;;  %v470_v61 = vpack.c.b16 %v441_v53, %v440_v57  ;;  %v101_v8 = vpop.permute.xlu2 %100 }
  0x9f   :  { %vm285_vm10 = vcmp.eq.s32.totalorder %v1353_v48, %v241_v32  ;;  %v234_v34 = vpop.permute.xlu0 %233  ;;  %586 = vmatmul.bf16.vlgmr.msra.gmra.mxu1 %v474_v29  ;;  %621 = vmatmul.bf16.gmra.mxu3 %v481_v30  ;;  %vm265_vm9 = vcmp.eq.s32.totalorder %v1353_v48, %v101_v8 }
  0xa0   :  { %vm284_vm12 = vcmp.eq.s32.totalorder %v1353_v48, %v234_v34  ;;  %561 = vmatmul.bf16.gmra.mxu0 %v469_v33  ;;  %v1111_v35 = vsel %vm285_vm10, 1.0, %v1266_v52  ;;  %v1091_v33 = vsel %vm265_vm9, 1.0, %v1266_v52 }
  0xa1   :  { %v1110_v36 = vsel %vm284_vm12, 1.0, %v1266_v52  ;;  %v381_v40 = vpack.c.bf16 %v1111_v35, %v1111_v35  ;;  %v361_v39 = vpack.c.bf16 %v1091_v33, %v1091_v33 }
  0xa2   :  { %v380_v41 = vpack.c.bf16 %v1110_v36, %v1110_v36 }
  0xa3   :  { %v465_v49 = vunpack.c.l.b16 %v381_v40  ;;  %v445_v44 = vunpack.c.l.b16 %v361_v39 }
  0xa4   :  { %v464_v50 = vunpack.c.l.b16 %v380_v41 }
  0xa6   :  { %v136_v43 = vpop.permute.xlu1 %135  ;;  %v482_v59 = vpack.c.b16 %v465_v49, %v464_v50  ;;  %v192_v24 = vpop.permute.xlu2 %191 }
  0xa7   :  { %vm270_vm15 = vcmp.eq.s32.totalorder %v1353_v48, %v136_v43  ;;  %v87_v45 = vpop.permute.xlu0 %86  ;;  %vm278_vm10 = vcmp.eq.s32.totalorder %v1353_v48, %v192_v24 }
  0xa8   :  { %v1096_v47 = vsel %vm270_vm15, 1.0, %v1266_v52  ;;  %vm263_vm1 = vcmp.eq.s32.totalorder %v1353_v48, %v87_v45  ;;  %v1104_v34 = vsel %vm278_vm10, 1.0, %v1266_v52  ;;  %vm1018_vm10 = vcmask 7168  }
  0xa9   :  { %v366_v51 = vpack.c.bf16 %v1096_v47, %v1096_v47  ;;  %v1089_v3 = vsel %vm263_vm1, 1.0, %v1266_v52  ;;  %v374_v40 = vpack.c.bf16 %v1104_v34, %v1104_v34 }
  0xaa   :  { %v359_v9 = vpack.c.bf16 %v1089_v3, %v1089_v3 }
  0xab   :  { %v450_v56 = vunpack.c.l.b16 %v366_v51  ;;  %v458_v45 = vunpack.c.l.b16 %v374_v40 }
  0xac   :  { %v443_v16 = vunpack.c.l.b16 %v359_v9 }
  0xad   :  { %v475_v58 = vpack.c.b16 %v451_v54, %v450_v56 }
  0xae   :  { %v185_v60 = vpop.permute.xlu1 %184  ;;  %v471_v22 = vpack.c.b16 %v443_v16, %v442_v18  ;;  %v115_v51 = vpop.permute.xlu2 %114 }
  0xaf   :  { %vm277_vm0 = vcmp.eq.s32.totalorder %v1353_v48, %v185_v60  ;;  %v178_v62 = vpop.permute.xlu0 %177  ;;  %591 = vmatmul.bf16.gmra.mxu1 %v475_v58  ;;  %626 = vmatmul.bf16.gmra.mxu3 %v482_v59  ;;  %vm267_vm15 = vcmp.eq.s32.totalorder %v1353_v48, %v115_v51 }
  0xb0   :  { %v1103_v63 = vsel %vm277_vm0, 1.0, %v1266_v52  ;;  %vm276_vm2 = vcmp.eq.s32.totalorder %v1353_v48, %v178_v62  ;;  %566 = vmatmul.bf16.gmra.mxu0 %v470_v61  ;;  %v1093_v61 = vsel %vm267_vm15, 1.0, %v1266_v52  ;;  %vm1052_vm15 = vcmp.eq.s32.totalorder %v1353_v48, 0 }
  0xb1   :  { %v373_v0 = vpack.c.bf16 %v1103_v63, %v1103_v63  ;;  %v1102_v1 = vsel %vm276_vm2, 1.0, %v1266_v52 }
  0xb2   :  { %v372_v2 = vpack.c.bf16 %v1102_v1, %v1102_v1 }
  0xb3   :  { %v457_v4 = vunpack.c.l.b16 %v373_v0  ;;  %v363_v0 = vpack.c.bf16 %v1093_v61, %v1093_v61 }
  0xb4   :  { %v456_v5 = vunpack.c.l.b16 %v372_v2 }
  0xb5   :  { %v447_v2 = vunpack.c.l.b16 %v363_v0 }
  0xb6   :  { %v94_v10 = vpop.permute.xlu1 %93  ;;  %v478_v11 = vpack.c.b16 %v457_v4, %v456_v5 }
  0xb7   :  { %v255_v12 = vpop.permute.xlu0 %254  ;;  %vm264_vm7 = vcmp.eq.s32.totalorder %v1353_v48, %v94_v10 }
  0xb8   :  { %vm287_vm5 = vcmp.eq.s32.totalorder %v1353_v48, %v255_v12  ;;  %606 = vmatmul.bf16.vlgmr.msra.gmra.mxu2 %v478_v11  ;;  %v1090_v30 = vsel %vm264_vm7, 1.0, %v1266_v52 }
  0xb9   :  { %v1113_v13 = vsel %vm287_vm5, 1.0, %v1266_v52  ;;  %v360_v35 = vpack.c.bf16 %v1090_v30, %v1090_v30 }
  0xba   :  { %v383_v17 = vpack.c.bf16 %v1113_v13, %v1113_v13 }
  0xbb   :  { %v444_v42 = vunpack.c.l.b16 %v360_v35 }
  0xbc   :  { %v467_v20 = vunpack.c.l.b16 %v383_v17  ;;  %v1438_v17 = vld [vmem:[%s1700_s2] ss:$0 sm:$0xff]  ;;  %s1271_s2 = smov 7  }
  0xbd   :  { %v472_v49 = vpack.c.b16 %v445_v44, %v444_v42 }
  0xbe   :  { %v157_v21 = vpop.permute.xlu1 %156  ;;  %v483_v23 = vpack.c.b16 %v467_v20, %v466_v19 }
  0xbf   :  { %vm273_vm6 = vcmp.eq.s32.totalorder %v1353_v48, %v157_v21  ;;  %v150_v25 = vpop.permute.xlu0 %149 }
  0xc0   :  { %v1099_v26 = vsel %vm273_vm6, 1.0, %v1266_v52  ;;  %vm272_vm8 = vcmp.eq.s32.totalorder %v1353_v48, %v150_v25  ;;  %571 = vmatmul.bf16.gmra.mxu0 %v471_v22  ;;  %631 = vmatmul.bf16.gmra.mxu3 %v483_v23 }
  0xc1   :  { %v369_v27 = vpack.c.bf16 %v1099_v26, %v1099_v26  ;;  %v1098_v28 = vsel %vm272_vm8, 1.0, %v1266_v52 }
  0xc2   :  { %v368_v29 = vpack.c.bf16 %v1098_v28, %v1098_v28 }
  0xc3   :  { %v453_v31 = vunpack.c.l.b16 %v369_v27 }
  0xc4   :  { %v452_v32 = vunpack.c.l.b16 %v368_v29 }
  0xc6   :  { %v108_v36 = vpop.permute.xlu1 %107  ;;  %v476_v37 = vpack.c.b16 %v453_v31, %v452_v32 }
  0xc7   :  { %v199_v38 = vpop.permute.xlu0 %198  ;;  %vm266_vm13 = vcmp.eq.s32.totalorder %v1353_v48, %v108_v36 }
  0xc8   :  { %vm279_vm11 = vcmp.eq.s32.totalorder %v1353_v48, %v199_v38  ;;  %596 = vmatmul.bf16.gmra.mxu1 %v476_v37  ;;  %v1092_v58 = vsel %vm266_vm13, 1.0, %v1266_v52  ;;  %vm956_vm13 = vcmp.eq.s32.totalorder %v1353_v48, 2 }
  0xc9   :  { %v1105_v41 = vsel %vm279_vm11, 1.0, %v1266_v52  ;;  %v362_v62 = vpack.c.bf16 %v1092_v58, %v1092_v58 }
  0xca   :  { %v375_v43 = vpack.c.bf16 %v1105_v41, %v1105_v41 }
  0xcb   :  { %v446_v1 = vunpack.c.l.b16 %v362_v62 }
  0xcc   :  { %v459_v46 = vunpack.c.l.b16 %v375_v43 }
  0xcd   :  { %v473_v3 = vpack.c.b16 %v447_v2, %v446_v1 }
  0xce   :  { %v171_v47 = vpop.permute.xlu1 %170  ;;  %v479_v50 = vpack.c.b16 %v459_v46, %v458_v45 }
  0xcf   :  { %vm275_vm12 = vcmp.eq.s32.totalorder %v1353_v48, %v171_v47  ;;  %v164_v53 = vpop.permute.xlu0 %163 }
  0xd0   :  { %v1101_v54 = vsel %vm275_vm12, 1.0, %v1266_v52  ;;  %vm274_vm14 = vcmp.eq.s32.totalorder %v1353_v48, %v164_v53  ;;  %576 = vmatmul.bf16.gmra.mxu0 %v472_v49  ;;  %611 = vmatmul.bf16.gmra.mxu2 %v479_v50 }
  0xd1   :  { %v371_v55 = vpack.c.bf16 %v1101_v54, %v1101_v54  ;;  %v1100_v56 = vsel %vm274_vm14, 1.0, %v1266_v52  ;;  %vm985_vm14 = vcmp.eq.s32.totalorder %v1353_v48, 3 }
  0xd2   :  { %v370_v57 = vpack.c.bf16 %v1100_v56, %v1100_v56 }
  0xd3   :  { %v455_v59 = vunpack.c.l.b16 %v371_v55 }
  0xd4   :  { %v454_v60 = vunpack.c.l.b16 %v370_v57 }
  0xd6   :  { %v477_v63 = vpack.c.b16 %v455_v59, %v454_v60 }
  0xd8   :  { %601 = vmatmul.bf16.gmra.mxu1 %v477_v63 }
  0xe0   :  { %581 = vmatmul.bf16.gmra.mxu0 %v473_v3 }
 0x10d   :  { %v1425_v4 = vpop.f32.mrf.mxu0 }
 0x112   :  { %v617_v5 = vpop.f32.mrf.mxu3 }
 0x113   :  { %v618_v55 = vadd.f32 %v1438_v17, %v617_v5 }
 0x115   :  { %v1427_v6 = vpop.f32.mrf.mxu0  ;;  %v661_v59 = vmax.f32 %v618_v55, 0.0  ;;  %v742_v55 = vld [vmem:[%s1702_s4 + $0x38] sm:$0xff] }
 0x11a   :  { %v619_v7 = vpop.f32.mrf.mxu3 }
 0x11b   :  { %v620_v53 = vadd.f32 %v1438_v17, %v619_v7 }
 0x11c   :  { %v587_v8 = vpop.f32.mrf.mxu1 }
 0x11d   :  { %v1429_v9 = vpop.f32.mrf.mxu0  ;;  %v588_v24 = vadd.f32 %v1438_v17, %v587_v8  ;;  %v662_v57 = vmax.f32 %v620_v53, 0.0  ;;  %v743_v53 = vld [vmem:[%s1702_s4 + $0x40] sm:$0xff] }
 0x11f   :  { %v649_v28 = vmax.f32 %v588_v24, 0.0 }
 0x122   :  { %v622_v10 = vpop.f32.mrf.mxu3 }
 0x123   :  { %v623_v47 = vadd.f32 %v1438_v17, %v622_v10 }
 0x124   :  { %v589_v11 = vpop.f32.mrf.mxu1 }
 0x125   :  { %v1431_v12 = vpop.f32.mrf.mxu0  ;;  %v590_v22 = vadd.f32 %v1438_v17, %v589_v11  ;;  %v663_v56 = vmax.f32 %v623_v47, 0.0 }
 0x127   :  { %v650_v27 = vmax.f32 %v590_v22, 0.0 }
 0x12a   :  { %v624_v14 = vpop.f32.mrf.mxu3 }
 0x12b   :  { %v625_v44 = vadd.f32 %v1438_v17, %v624_v14 }
 0x12c   :  { %v592_v15 = vpop.f32.mrf.mxu1 }
 0x12d   :  { %v1433_v13 = vpop.f32.mrf.mxu0  ;;  %v593_v19 = vadd.f32 %v1438_v17, %v592_v15  ;;  %v664_v54 = vmax.f32 %v625_v44, 0.0 }
 0x12f   :  { %v651_v25 = vmax.f32 %v593_v19, 0.0 }
 0x132   :  { %v627_v16 = vpop.f32.mrf.mxu3 }
 0x133   :  { %v628_v42 = vadd.f32 %v1438_v17, %v627_v16 }
 0x134   :  { %v594_v18 = vpop.f32.mrf.mxu1 }
 0x135   :  { %v1441_v20 = vpop.f32.mrf.mxu0  ;;  %v595_v21 = vadd.f32 %v1438_v17, %v594_v18  ;;  %v665_v49 = vmax.f32 %v628_v42, 0.0  ;;  %v749_v42 = vld [vmem:[%s1702_s4 + $0x70] sm:$0xff] }
 0x137   :  { %v652_v23 = vmax.f32 %v595_v21, 0.0 }
 0x139   :  { %677 = vmatpush.msrb.mxu1 %v652_v23 }
 0x13a   :  { %v629_v26 = vpop.f32.mrf.mxu3 }
 0x13b   :  { %678 = vmatpush.msrb.mxu1 %v651_v25  ;;  %v607_v30 = vpop.f32.mrf.mxu2  ;;  %v630_v40 = vadd.f32 %v1438_v17, %v629_v26 }
 0x13c   :  { %v608_v2 = vadd.f32 %v1438_v17, %v607_v30 }
 0x13d   :  { %v1446_v29 = vpop.f32.mrf.mxu0  ;;  %679 = vmatpush.msrb.mxu1 %v650_v27  ;;  %v666_v45 = vmax.f32 %v630_v40, 0.0  ;;  %v563_v40 = vadd.f32 %v1438_v17, %v1429_v9 }
 0x13e   :  { %v657_v8 = vmax.f32 %v608_v2, 0.0 }
 0x13f   :  { %680 = vmatpush.msrb.mxu1 %v649_v28  ;;  %v639_v9 = vmax.f32 %v563_v40, 0.0 }
 0x143   :  { %v632_v31 = vpop.f32.mrf.mxu3  ;;  %v609_v34 = vpop.f32.mrf.mxu2 }
 0x144   :  { %v633_v36 = vadd.f32 %v1438_v17, %v632_v31  ;;  %v610_v63 = vadd.f32 %v1438_v17, %v609_v34  ;;  %v670_v31 = vld [vmem:[%s1701_s3 + $0x8] sm:$0xff] }
 0x145   :  { %v1448_v32 = vpop.f32.mrf.mxu0  ;;  %v597_v33 = vpop.f32.mrf.mxu1 }
 0x146   :  { %v667_v43 = vmax.f32 %v633_v36, 0.0  ;;  %v658_v5 = vmax.f32 %v610_v63, 0.0  ;;  %v598_v19 = vadd.f32 %v1438_v17, %v597_v33  ;;  %v575_v27 = vadd.f32 %v1438_v17, %v1448_v32  ;;  %v736_v63 = vld [vmem:[%s1702_s4 + $0x8] sm:$0xff] }
 0x147   :  { %v573_v33 = vadd.f32 %v1438_v17, %v1446_v29  ;;  %v568_v32 = vadd.f32 %v1438_v17, %v1433_v13  ;;  %v672_v29 = vld [vmem:[%s1701_s3 + $0x18] sm:$0xff]  ;;  %v560_v13 = vadd.f32 %v1438_v17, %v1427_v6  ;;  %v748_v6 = vld [vmem:[%s1702_s4 + $0x68] sm:$0xff] }
 0x148   :  { %v653_v28 = vmax.f32 %v598_v19, 0.0  ;;  %v644_v36 = vmax.f32 %v575_v27, 0.0  ;;  %v1211_v19 = vld [vmem:[%s1703_s5] ss:$0 sm:$0xff]  ;;  %s1269_s5 = smov 1  }
 0x149   :  { %v638_v44 = vmax.f32 %v560_v13, 0.0 }
 0x14b   :  { %v634_v35 = vpop.f32.mrf.mxu3 }
 0x14c   :  { %v635_v37 = vadd.f32 %v1438_v17, %v634_v35  ;;  %v570_v35 = vadd.f32 %v1438_v17, %v1441_v20  ;;  %v641_v20 = vmax.f32 %v568_v32, 0.0 }
 0x14d   :  { %v577_v38 = vpop.f32.mrf.mxu0  ;;  %v599_v39 = vpop.f32.mrf.mxu1 }
 0x14e   :  { %v668_v41 = vmax.f32 %v635_v37, 0.0  ;;  %v600_v14 = vadd.f32 %v1438_v17, %v599_v39  ;;  %v578_v24 = vadd.f32 %v1438_v17, %v577_v38  ;;  %v643_v37 = vmax.f32 %v573_v33, 0.0 }
 0x14f   :  { %v565_v38 = vadd.f32 %v1438_v17, %v1431_v12  ;;  %v642_v39 = vmax.f32 %v570_v35, 0.0  ;;  %v750_v12 = vld [vmem:[%s1702_s4 + $0x78] sm:$0xff] }
 0x150   :  { %706 = vmatpush.msrb.mxu2 %v668_v41  ;;  %v654_v25 = vmax.f32 %v600_v14, 0.0  ;;  %v645_v34 = vmax.f32 %v578_v24, 0.0  ;;  %755 = vmatpush.msrb.mxu3 %v750_v12 }
 0x151   :  { %v640_v41 = vmax.f32 %v565_v38, 0.0 }
 0x152   :  { %707 = vmatpush.msrb.mxu2 %v667_v43  ;;  %v558_v43 = vadd.f32 %v1438_v17, %v1425_v4  ;;  %756 = vmatpush.msrb.mxu3 %v749_v42  ;;  %v669_v4 = vld [vmem:[%s1701_s3] sm:$0xff] }
 0x153   :  { %v612_v46 = vpop.f32.mrf.mxu2 }
 0x154   :  { %708 = vmatpush.msrb.mxu2 %v666_v45  ;;  %v613_v60 = vadd.f32 %v1438_v17, %v612_v46  ;;  %v674_v45 = vld [vmem:[%s1701_s3 + $0x28] sm:$0xff]  ;;  %v747_v46 = vld [vmem:[%s1702_s4 + $0x60] sm:$0xff]  ;;  %v637_v47 = vmax.f32 %v558_v43, 0.0  ;;  %757 = vmatpush.msrb.mxu3 %v748_v6 }
 0x155   :  { %v579_v50 = vpop.f32.mrf.mxu0  ;;  %v602_v51 = vpop.f32.mrf.mxu1 }
 0x156   :  { %709 = vmatpush.msrb.mxu2 %v665_v49  ;;  %v659_v3 = vmax.f32 %v613_v60, 0.0  ;;  %v603_v10 = vadd.f32 %v1438_v17, %v602_v51  ;;  %v580_v21 = vadd.f32 %v1438_v17, %v579_v50  ;;  %758 = vmatpush.msrb.mxu3 %v747_v46  ;;  %v745_v49 = vld [vmem:[%s1702_s4 + $0x50] sm:$0xff]  ;;  %v744_v50 = vld [vmem:[%s1702_s4 + $0x48] sm:$0xff]  ;;  %v676_v51 = vld [vmem:[%s1701_s3 + $0x38] sm:$0xff] }
 0x157   :  { %v738_v60 = vld [vmem:[%s1702_s4 + $0x18] sm:$0xff] }
 0x158   :  { %710 = vmatpush.msrb.mxu2 %v664_v54  ;;  %v655_v22 = vmax.f32 %v603_v10, 0.0  ;;  %v646_v30 = vmax.f32 %v580_v21, 0.0  ;;  %v671_v54 = vld [vmem:[%s1701_s3 + $0x10] sm:$0xff] }
 0x15a   :  { %711 = vmatpush.msrb.mxu2 %v663_v56  ;;  %v741_v56 = vld [vmem:[%s1702_s4 + $0x30] sm:$0xff] }
 0x15b   :  { %v614_v58 = vpop.f32.mrf.mxu2 }
 0x15c   :  { %v615_v61 = vadd.f32 %v1438_v17, %v614_v58  ;;  %712 = vmatpush.msrb.mxu2 %v662_v57  ;;  %v740_v57 = vld [vmem:[%s1702_s4 + $0x28] sm:$0xff]  ;;  %v739_v58 = vld [vmem:[%s1702_s4 + $0x20] sm:$0xff] }
 0x15d   :  { %v582_v62 = vpop.f32.mrf.mxu0  ;;  %v604_v1 = vpop.f32.mrf.mxu1 }
 0x15e   :  { %v660_v0 = vmax.f32 %v615_v61, 0.0  ;;  %713 = vmatpush.msrb.mxu2 %v661_v59  ;;  %v605_v7 = vadd.f32 %v1438_v17, %v604_v1  ;;  %v583_v15 = vadd.f32 %v1438_v17, %v582_v62  ;;  %v673_v59 = vld [vmem:[%s1701_s3 + $0x20] sm:$0xff]  ;;  %v737_v61 = vld [vmem:[%s1702_s4 + $0x10] sm:$0xff] }
 0x15f   :  { %v675_v62 = vld [vmem:[%s1701_s3 + $0x30] sm:$0xff] }
 0x160   :  { %714 = vmatpush.msrb.mxu2 %v660_v0  ;;  %v656_v16 = vmax.f32 %v605_v7, 0.0  ;;  %v647_v26 = vmax.f32 %v583_v15, 0.0  ;;  %v735_v0 = vld [vmem:[%s1702_s4] sm:$0xff] }
 0x162   :  { %715 = vmatpush.msrb.mxu2 %v659_v3 }
 0x164   :  { %716 = vmatpush.msrb.mxu2 %v658_v5 }
 0x165   :  { %v584_v11 = vpop.f32.mrf.mxu0 }
 0x166   :  { %v585_v18 = vadd.f32 %v1438_v17, %v584_v11  ;;  %717 = vmatpush.msrb.mxu2 %v657_v8  ;;  %v746_v17 = vld [vmem:[%s1702_s4 + $0x58] sm:$0xff]  ;;  %s1267_s4 = smov 127  }
 0x167   :  { %759 = vmatpush.msrb.mxu3 %v746_v17 }
 0x168   :  { %v648_v23 = vmax.f32 %v585_v18, 0.0  ;;  %718 = vmatpush.msrb.mxu2 %v656_v16 }
 0x169   :  { %760 = vmatpush.msrb.mxu3 %v745_v49  ;;  %v1237_v49 = vld [vmem:[%s1698_s0 + $0x8] sm:$0xff] }
 0x16a   :  { %681 = vmatpush.msrb.mxu1 %v648_v23  ;;  %719 = vmatpush.msrb.mxu2 %v655_v22  ;;  %vm877_vm0 = vcmp.eq.s32.totalorder %v1237_v49, 1 }
 0x16b   :  { %761 = vmatpush.msrb.mxu3 %v744_v50 }
 0x16c   :  { %682 = vmatpush.msrb.mxu1 %v647_v26  ;;  %720 = vmatpush.msrb.mxu2 %v654_v25 }
 0x16d   :  { %762 = vmatpush.msrb.mxu3 %v743_v53 }
 0x16e   :  { %683 = vmatpush.msrb.mxu1 %v646_v30  ;;  %721 = vmatpush.msrb.mxu2 %v653_v28  ;;  %v1268_v30 = vmov 0  }
 0x16f   :  { %722 = vmatmul.f32.vlgmr.msrb.gmra.mxu2 %v670_v31  ;;  %763 = vmatpush.msrb.mxu3 %v742_v55 }
 0x170   :  { %684 = vmatpush.msrb.mxu1 %v645_v34  ;;  %1198 = vset.pattern.permute.xlu2 %v1268_v30 }
 0x171   :  { %764 = vmatpush.msrb.mxu3 %v741_v56  ;;  %1209 = vset.pattern.permute.xlu0 %v1268_v30  ;;  %v1238_v56 = vld [vmem:[%s1698_s0 + $0x10] sm:$0xff] }
 0x172   :  { %685 = vmatpush.msrb.mxu1 %v644_v36  ;;  %vm878_vm2 = vcmp.eq.s32.totalorder %v1238_v56, 1 }
 0x173   :  { %765 = vmatpush.msrb.mxu3 %v740_v57 }
 0x174   :  { %686 = vmatpush.msrb.mxu1 %v643_v37 }
 0x175   :  { %766 = vmatpush.msrb.mxu3 %v739_v58 }
 0x176   :  { %687 = vmatpush.msrb.mxu1 %v642_v39 }
 0x177   :  { %725 = vmatmul.f32.gmra.mxu2 %v672_v29  ;;  %767 = vmatpush.msrb.mxu3 %v738_v60 }
 0x178   :  { %688 = vmatpush.msrb.mxu1 %v641_v20 }
 0x179   :  { %768 = vmatpush.msrb.mxu3 %v737_v61  ;;  %v1239_v61 = vld [vmem:[%s1698_s0 + $0x18] sm:$0xff] }
 0x17a   :  { %689 = vmatpush.msrb.mxu1 %v640_v41  ;;  %vm879_vm3 = vcmp.eq.s32.totalorder %v1239_v61, 1 }
 0x17b   :  { %769 = vmatpush.msrb.mxu3 %v736_v63 }
 0x17c   :  { %690 = vmatpush.msrb.mxu1 %v639_v9 }
 0x17d   :  { %770 = vmatpush.msrb.mxu3 %v735_v0 }
 0x17e   :  { %691 = vmatpush.msrb.mxu1 %v638_v44 }
 0x17f   :  { %728 = vmatmul.f32.gmra.mxu2 %v674_v45 }
 0x180   :  { %692 = vmatpush.msrb.mxu1 %v637_v47 }
 0x181   :  { %693 = vmatmul.f32.vlgmr.msrb.gmra.mxu1 %v669_v4  ;;  %v1236_v4 = vld [vmem:[%s1698_s0] sm:$0xff]  ;;  %s1273_s0 = smov [#allocation2]  }
 0x182   :  { %vm876_vm1 = vcmp.eq.s32.totalorder %v1236_v4, 1  ;;  %s1064_s12 = sshll.u32 %s1273_s0, 4  ;;  %s1065_s12 = int_to_ptr.vmem [resolvable:$true] %s1064_s12 }
 0x187   :  { %731 = vmatmul.f32.gmra.mxu2 %v676_v51 }
 0x189   :  { %696 = vmatmul.f32.gmra.mxu1 %v671_v54 }
 0x191   :  { %699 = vmatmul.f32.gmra.mxu1 %v673_v59 }
 0x199   :  { %702 = vmatmul.f32.gmra.mxu1 %v675_v62 }
 0x1f2   :  { %v723_v1 = vpop.f32.mrf.mxu2 }
 0x1fa   :  { %v726_v5 = vpop.f32.mrf.mxu2 }
 0x1fe   :  { %v694_v2 = vpop.f32.mrf.mxu1 }
 0x1ff   :  { %v724_v3 = vadd.f32 %v723_v1, %v694_v2 }
 0x201   :  { %771 = vmatmul.f32.vlgmr.msrb.gmra.mxu3 %v724_v3 }
 0x202   :  { %v729_v10 = vpop.f32.mrf.mxu2 }
 0x206   :  { %v697_v7 = vpop.f32.mrf.mxu1 }
 0x207   :  { %v727_v8 = vadd.f32 %v726_v5, %v697_v7 }
 0x209   :  { %774 = vmatmul.f32.gmra.mxu3 %v727_v8 }
 0x20a   :  { %v732_v15 = vpop.f32.mrf.mxu2 }
 0x20e   :  { %v700_v11 = vpop.f32.mrf.mxu1 }
 0x20f   :  { %v730_v14 = vadd.f32 %v729_v10, %v700_v11 }
 0x211   :  { %777 = vmatmul.f32.gmra.mxu3 %v730_v14 }
 0x216   :  { %v703_v16 = vpop.f32.mrf.mxu1 }
 0x217   :  { %v733_v18 = vadd.f32 %v732_v15, %v703_v16 }
 0x219   :  { %780 = vmatmul.f32.gmra.mxu3 %v733_v18 }
 0x284   :  { %v772_v21 = vpop.f32.mrf.mxu3 }
 0x285   :  { %v1561_v22 = vadd.f32 %v1211_v19, %v772_v21 }
 0x287   :  { %788 = vrot.lane.b32.xlu2 %v1561_v22, %s1267_s4 }
 0x28c   :  { %v775_v23 = vpop.f32.mrf.mxu3 }
 0x28d   :  { %v1565_v24 = vadd.f32 %v1211_v19, %v775_v23 }
 0x28f   :  { %790 = vrot.lane.b32.xlu0 %v1565_v24, %s1267_s4 }
 0x294   :  { %v778_v25 = vpop.f32.mrf.mxu3 }
 0x295   :  { %v1569_v26 = vadd.f32 %v1211_v19, %v778_v25 }
 0x297   :  { %792 = vrot.lane.b32.xlu1 %v1569_v26, %s1267_s4 }
 0x29c   :  { %v781_v27 = vpop.f32.mrf.mxu3 }
 0x29d   :  { %v1573_v28 = vadd.f32 %v1211_v19, %v781_v27 }
 0x29f   :  { %794 = vrot.lane.b32.xlu2 %v1573_v28, %s1267_s4 }
 0x2e1   :  { %v1579_v31 = vpop.permute.xlu2 %788 }
 0x2e2   :  { %v1583_v33 = vmax.f32 %v1561_v22, %v1579_v31  ;;  %vm928_vm4 = vcmp.lt.f32.partialorder %v1561_v22, %v1579_v31 }
 0x2e4   :  { %820 = vrot.lane.b32.xlu0 %v1583_v33, %s1269_s5  ;;  %v804_v1 = vsub.f32 %v1561_v22, %v1583_v33 }
 0x2e6   :  { %v808_v2 = vmul.f32 1.442695, %v804_v1 }
 0x2f9   :  { %v1586_v34 = vpop.permute.xlu2 %794 }
 0x2fa   :  { %v1590_v35 = vmax.f32 %v1573_v28, %v1586_v34  ;;  %vm931_vm6 = vcmp.lt.f32.partialorder %v1573_v28, %v1586_v34 }
 0x2fc   :  { %826 = vrot.lane.b32.xlu0 %v1590_v35, %s1269_s5  ;;  %v807_v16 = vsub.f32 %v1573_v28, %v1590_v35 }
 0x2fe   :  { %v814_v21 = vmul.f32 1.442695, %v807_v16 }
 0x301   :  { %v1593_v36 = vpop.permute.xlu0 %790 }
 0x302   :  { %v1597_v32 = vmax.f32 %v1565_v24, %v1593_v36  ;;  %vm929_vm7 = vcmp.lt.f32.partialorder %v1565_v24, %v1593_v36 }
 0x304   :  { %822 = vrot.lane.b32.xlu1 %v1597_v32, %s1269_s5  ;;  %892 = vrot.lane.b32.xlu0 %v1561_v22, %s1270_s25  ;;  %v805_v3 = vsub.f32 %v1565_v24, %v1597_v32 }
 0x306   :  { %v810_v10 = vmul.f32 1.442695, %v805_v3 }
 0x309   :  { %v1602_v37 = vpop.permute.xlu1 %792 }
 0x30a   :  { %v1606_v38 = vmax.f32 %v1569_v26, %v1602_v37  ;;  %vm930_vm5 = vcmp.lt.f32.partialorder %v1569_v26, %v1602_v37 }
 0x30c   :  { %880 = vrot.lane.b32.xlu1 %v1561_v22, %s1271_s2  ;;  %824 = vrot.lane.b32.xlu2 %v1606_v38, %s1269_s5  ;;  %v806_v8 = vsub.f32 %v1569_v26, %v1606_v38 }
 0x30d   :  { %896 = vrot.lane.b32.xlu0 %v1569_v26, %s1270_s25 }
 0x30e   :  { %v812_v14 = vmul.f32 1.442695, %v806_v8 }
 0x314   :  { %894 = vrot.lane.b32.xlu1 %v1565_v24, %s1270_s25  ;;  %882 = vrot.lane.b32.xlu2 %v1565_v24, %s1271_s2 }
 0x31c   :  { %886 = vrot.lane.b32.xlu1 %v1573_v28, %s1271_s2  ;;  %884 = vrot.lane.b32.xlu2 %v1569_v26, %s1271_s2 }
 0x324   :  { %898 = vrot.lane.b32.xlu2 %v1573_v28, %s1270_s25 }
 0x356   :  { %v821_v39 = vpop.permute.xlu0 %820 }
 0x357   :  { %v832_v29 = vsub.f32 %v1561_v22, %v821_v39 }
 0x359   :  { %v836_v40 = vmul.f32 1.442695, %v832_v29 }
 0x35b   :  { %1212 = vpow2.f32 %v836_v40 }
 0x361   :  { %v1213_v20 = vpop.eup %1212 }
 0x362   :  { %848 = vrot.lane.b32.xlu0 %v1213_v20, %s1267_s4 }
 0x366   :  { %v825_v44 = vpop.permute.xlu2 %824 }
 0x367   :  { %v834_v47 = vsub.f32 %v1569_v26, %v825_v44 }
 0x369   :  { %v840_v50 = vmul.f32 1.442695, %v834_v47 }
 0x36e   :  { %v827_v13 = vpop.permute.xlu0 %826  ;;  %v883_v17 = vpop.permute.xlu2 %882 }
 0x36f   :  { %v835_v41 = vsub.f32 %v1573_v28, %v827_v13 }
 0x371   :  { %v842_v12 = vmul.f32 1.442695, %v835_v41 }
 0x373   :  { %1214 = vpow2.f32 %v842_v12 }
 0x376   :  { %v823_v42 = vpop.permute.xlu1 %822  ;;  %v893_v54 = vpop.permute.xlu0 %892 }
 0x377   :  { %v833_v43 = vsub.f32 %v1565_v24, %v823_v42  ;;  %v885_v57 = vpop.permute.xlu2 %884 }
 0x379   :  { %v1215_v9 = vpop.eup %1214  ;;  %v838_v6 = vmul.f32 1.442695, %v833_v43 }
 0x37a   :  { %854 = vrot.lane.b32.xlu0 %v1215_v9, %s1267_s4 }
 0x37b   :  { %1216 = vpow2.f32 %v838_v6 }
 0x37c   :  { %1218 = vpow2.f32 %v840_v50 }
 0x37d   :  { %1220 = vpow2.f32 %v808_v2 }
 0x37e   :  { %v881_v45 = vpop.permute.xlu1 %880  ;;  %1222 = vpow2.f32 %v810_v10 }
 0x37f   :  { %v904_v55 = vsel %vm876_vm1, %v881_v45, %v893_v54  ;;  %v897_v59 = vpop.permute.xlu0 %896  ;;  %v899_v63 = vpop.permute.xlu2 %898  ;;  %1224 = vpow2.f32 %v812_v14 }
 0x380   :  { %v906_v62 = vsel %vm878_vm2, %v885_v57, %v897_v59 }
 0x381   :  { %v1217_v46 = vpop.eup %1216 }
 0x382   :  { %850 = vrot.lane.b32.xlu1 %v1217_v46, %s1267_s4  ;;  %936 = vrot.lane.b32.xlu0 %v1236_v4, %s1272_s28  ;;  %v1219_v58 = vpop.eup %1218  ;;  %v932_v4 = vsel %vm928_vm4, 1, %v1268_v30 }
 0x383   :  { %v1221_v11 = vpop.eup %1220 }
 0x384   :  { %v1223_v23 = vpop.eup %1222 }
 0x385   :  { %v1225_v25 = vpop.eup %1224 }
 0x386   :  { %v895_v51 = vpop.permute.xlu1 %894 }
 0x387   :  { %v905_v53 = vsel %vm877_vm0, %v883_v17, %v895_v51  ;;  %v935_v51 = vsel %vm931_vm6, 1, %v1268_v30  ;;  %vm1055_vm0 = vcmp.eq.s32.totalorder %v1353_v48, 1 }
 0x388   :  { %914 = vrot.lane.b32.xlu2 %v905_v53, %s1272_s28  ;;  %v933_v53 = vsel %vm929_vm7, 1, %v1268_v30 }
 0x38a   :  { %940 = vrot.lane.b32.xlu0 %v1238_v56, %s1272_s28  ;;  %912 = vrot.lane.b32.xlu1 %v904_v55, %s1272_s28 }
 0x38e   :  { %v887_v60 = vpop.permute.xlu1 %886 }
 0x38f   :  { %v907_v0 = vsel %vm879_vm3, %v887_v60, %v899_v63 }
 0x390   :  { %852 = vrot.lane.b32.xlu2 %v1219_v58, %s1267_s4 }
 0x392   :  { %938 = vrot.lane.b32.xlu1 %v1237_v49, %s1272_s28  ;;  %v934_v49 = vsel %vm930_vm5, 1, %v1268_v30 }
 0x398   :  { %916 = vrot.lane.b32.xlu2 %v906_v62, %s1272_s28 }
 0x39a   :  { %918 = vrot.lane.b32.xlu1 %v907_v0, %s1272_s28 }
 0x3a0   :  { %942 = vrot.lane.b32.xlu2 %v1239_v61, %s1272_s28 }
 0x3d4   :  { %v849_v5 = vpop.permute.xlu0 %848 }
 0x3d5   :  { %v860_v15 = vadd.f32 %v1221_v11, %v849_v5 }
 0x3d7   :  { %1226 = vlog2.f32 %v860_v15 }
 0x3d8   :  { %1228 = vpow2.f32 %v814_v21 }
 0x3dd   :  { %v1227_v27 = vpop.eup %1226 }
 0x3de   :  { %v865_v13 = vmul.f32 0.6931472, %v1227_v27  ;;  %v1229_v12 = vpop.eup %1228 }
 0x3e0   :  { %v872_v43 = vadd.f32 %v865_v13, %v1583_v33 }
 0x3e2   :  { %v915_v7 = vpop.permute.xlu2 %914 }
 0x3ea   :  { %v853_v19 = vpop.permute.xlu2 %852 }
 0x3eb   :  { %v862_v39 = vadd.f32 %v1225_v25, %v853_v19 }
 0x3ec   :  { %v855_v18 = vpop.permute.xlu0 %854 }
 0x3ed   :  { %v863_v42 = vadd.f32 %v1229_v12, %v855_v18 }
 0x3f2   :  { %v917_v41 = vpop.permute.xlu2 %916 }
 0x3f4   :  { %v851_v29 = vpop.permute.xlu1 %850  ;;  %v937_v20 = vpop.permute.xlu0 %936 }
 0x3f5   :  { %v861_v40 = vadd.f32 %v1223_v23, %v851_v29  ;;  %vm944_vm8 = vcmp.eq.s32.totalorder %v932_v4, %v937_v20 }
 0x3f7   :  { %1230 = vlog2.f32 %v861_v40 }
 0x3f8   :  { %1232 = vlog2.f32 %v862_v39 }
 0x3f9   :  { %1234 = vlog2.f32 %v863_v42 }
 0x3fa   :  { %v943_v33 = vpop.permute.xlu2 %942 }
 0x3fb   :  { %vm947_vm11 = vcmp.eq.s32.totalorder %v935_v51, %v943_v33 }
 0x3fc   :  { %v913_v9 = vpop.permute.xlu1 %912  ;;  %v941_v17 = vpop.permute.xlu0 %940  ;;  %v1149_v60 = vsel %vm947_vm11, 1.0, %v1266_v52 }
 0x3fd   :  { %v1231_v6 = vpop.eup %1230  ;;  %v924_v44 = vsub.f32 %v872_v43, %v913_v9  ;;  %vm946_vm9 = vcmp.eq.s32.totalorder %v934_v49, %v941_v17  ;;  %v1040_v2 = vsel %vm1018_vm10, %v1149_v60, 0.0 }
 0x3fe   :  { %v1233_v45 = vpop.eup %1232  ;;  %v867_v46 = vmul.f32 0.6931472, %v1231_v6  ;;  %v1148_v36 = vsel %vm946_vm9, 1.0, %v1266_v52 }
 0x3ff   :  { %959 = vperm.xlu2 %1198, %v924_v44   ;;  %v869_v31 = vmul.f32 0.6931472, %v1233_v45  ;;  %v1235_v37 = vpop.eup %1234  ;;  %v1038_v62 = vsel %vm1018_vm10, %v1148_v36, 0.0  ;;  %v1204_v15 = vpack.i.bf16 %v1149_v60, %v1148_v36 }
 0x400   :  { %v873_v47 = vadd.f32 %v867_v46, %v1597_v32  ;;  %v1146_v32 = vsel %vm944_vm8, 1.0, %v1266_v52  ;;  %v871_v56 = vmul.f32 0.6931472, %v1235_v37 }
 0x401   :  { %v874_v34 = vadd.f32 %v869_v31, %v1606_v38  ;;  %v1035_v57 = vsel %vm1018_vm10, %v1146_v32, 0.0  ;;  %v1019_v38 = vsel %vm1018_vm10, %v924_v44, 0.0 }
 0x402   :  { %v925_v50 = vsub.f32 %v873_v47, %v915_v7  ;;  %v875_v1 = vadd.f32 %v871_v56, %v1590_v35 }
 0x403   :  { %v926_v61 = vsub.f32 %v874_v34, %v917_v41 }
 0x404   :  { %v939_v54 = vpop.permute.xlu1 %938  ;;  %v1020_v58 = vsel %vm1018_vm10, %v925_v50, 0.0 }
 0x405   :  { %vm945_vm12 = vcmp.eq.s32.totalorder %v933_v53, %v939_v54  ;;  %v1021_v63 = vadd.f32 %v1020_v58, %v1019_v38  ;;  %v1022_v7 = vsel %vm1018_vm10, %v926_v61, 0.0 }
 0x406   :  { %v1147_v55 = vsel %vm945_vm12, 1.0, %v1266_v52 }
 0x407   :  { %v1036_v59 = vsel %vm1018_vm10, %v1147_v55, 0.0  ;;  %964 = vperm.xlu2 %1198, %v925_v50   ;;  %v1023_v10 = vadd.f32 %v1022_v7, %v1021_v63  ;;  %v1199_v14 = vpack.i.bf16 %v1147_v55, %v1146_v32 }
 0x408   :  { %v1037_v30 = vadd.f32 %v1036_v59, %v1035_v57 }
 0x40a   :  { %v1039_v0 = vadd.f32 %v1038_v62, %v1037_v30 }
 0x40c   :  { %v919_v3 = vpop.permute.xlu1 %918  ;;  %v1041_v5 = vadd.f32 %v1040_v2, %v1039_v0 }
 0x40d   :  { %v927_v8 = vsub.f32 %v875_v1, %v919_v3 }
 0x40e   :  { %1042 = vadd.xlane.f32.xlu1 %v1041_v5 }
 0x40f   :  { %969 = vperm.xlu2 %1198, %v926_v61   ;;  %v1024_v52 = vsel %vm1018_vm10, %v927_v8, 0.0 }
 0x410   :  { %v1025_v11 = vadd.f32 %v1024_v52, %v1023_v10 }
 0x412   :  { %1026 = vadd.xlane.f32.xlu0 %v1025_v11 }
 0x417   :  { %974 = vperm.xlu2 %1198, %v927_v8  }
 0x41f   :  { %1200 = vperm.xlu2 %1198, %v1199_v14  }
 0x427   :  { %1205 = vperm.xlu2 %1198, %v1204_v15  }
 0x459   :  { %v960_v35 = vpop.permute.xlu2 %959 }
 0x45a   :  { %v977_v21 = vsel %vm956_vm13, %v960_v35, 0.0 }
 0x45b   :  { %v981_v29 = vadd.f32 %v977_v21, %v1561_v22 }
 0x461   :  { %v965_v16 = vpop.permute.xlu2 %964 }
 0x462   :  { %v978_v23 = vsel %vm956_vm13, %v965_v16, 0.0 }
 0x463   :  { %v982_v40 = vadd.f32 %v978_v23, %v1565_v24 }
 0x469   :  { %v970_v18 = vpop.permute.xlu2 %969 }
 0x46a   :  { %v979_v42 = vsel %vm956_vm13, %v970_v18, 0.0 }
 0x46b   :  { %v983_v22 = vadd.f32 %v979_v42, %v1569_v26 }
 0x471   :  { %v975_v19 = vpop.permute.xlu2 %974 }
 0x472   :  { %v980_v43 = vsel %vm956_vm13, %v975_v19, 0.0 }
 0x473   :  { %v984_v24 = vadd.f32 %v980_v43, %v1573_v28 }
 0x479   :  { %v1201_v25 = vpop.permute.xlu2 %1200 }
 0x47a   :  { %v1203_v27 = vunpack.i.h.bf16 %v1201_v25  ;;  %v1202_v39 = vunpack.i.l.bf16 %v1201_v25 }
 0x47c   :  { %v1007_v20 = vsel %vm985_vm14, %v1203_v27, 0.0  ;;  %v1006_v13 = vsel %vm985_vm14, %v1202_v39, 0.0 }
 0x47d   :  { %v1011_v41 = vadd.f32 %v1007_v20, %v982_v40  ;;  %v1010_v12 = vadd.f32 %v1006_v13, %v981_v29 }
 0x47f   :  { %1015 = vst [vmem:[#allocation2 + $0x8] sm:$0xff] %v1011_v41 }
 0x480   :  { %1014 = vst [vmem:[#allocation2] sm:$0xff] %v1010_v12 }
 0x481   :  { %v1043_v9 = vpop.xlane.xlu1 %1042  ;;  %v1206_v6 = vpop.permute.xlu2 %1205 }
 0x482   :  { %v1044_v44 = vrot.slane %v1043_v9, 4  ;;  %v1208_v45 = vunpack.i.h.bf16 %v1206_v6  ;;  %v1207_v46 = vunpack.i.l.bf16 %v1206_v6 }
 0x484   :  { %v1045_v47 = vadd.f32 %v1044_v44, %v1043_v9  ;;  %v1009_v4 = vsel %vm985_vm14, %v1208_v45, 0.0  ;;  %v1008_v17 = vsel %vm985_vm14, %v1207_v46, 0.0 }
 0x485   :  { %v1013_v31 = vadd.f32 %v1009_v4, %v984_v24  ;;  %v1012_v33 = vadd.f32 %v1008_v17, %v983_v22  ;;  %v1027_v49 = vpop.xlane.xlu0 %1026 }
 0x486   :  { %v1046_v50 = vrot.slane %v1045_v47, 2  ;;  %v1028_v37 = vrot.slane %v1027_v49, 4 }
 0x487   :  { %1017 = vst [vmem:[#allocation2 + $0x18] sm:$0xff] %v1013_v31 }
 0x488   :  { %1016 = vst [vmem:[#allocation2 + $0x10] sm:$0xff] %v1012_v33  ;;  %v1029_v26 = vadd.f32 %v1028_v37, %v1027_v49  ;;  %v1047_v28 = vadd.f32 %v1046_v50, %v1045_v47 }
 0x489   :  { %1072 = dma.vmem_to_hbm [thread:$0]  %s1065_s12, 512, %s1067_s15, [#allocation3], %s1274_s16, %s1274_s16, %s1270_s25  }
 0x48a   :  { %v1030_v32 = vrot.slane %v1029_v26, 2  ;;  %v1048_v53 = vrot.slane %v1047_v28, 1 }
 0x48c   :  { %v1031_v51 = vadd.f32 %v1030_v32, %v1029_v26  ;;  %v1049_v36 = vadd.f32 %v1048_v53, %v1047_v28 }
 0x48e   :  { %v1032_v54 = vrot.slane %v1031_v51, 1 }
 0x490   :  { %v1033_v34 = vadd.f32 %v1032_v54, %v1031_v51 }
 0x492   :  { %1182 = vpush %v1033_v34 }
 0x493   :  { %1184 = vpush %v1049_v36 }
 0x4c3   :  { %s1183_s6 = spop %1182 }
 0x4c4   :  { %s1185_s17 = spop %1184  ;;  %v1053_v55 = vstv %s1183_s6 }
 0x4c5   :  { %s1051_s18 = smul.f32 0.03125, %s1185_s17  ;;  %v1054_v57 = vsel %vm1052_vm15, %v1053_v55, 0.0 }
 0x4c7   :  { %v1056_v56 = vstv %s1051_s18 }
 0x4c8   :  { %v1057_v58 = vsel %vm1055_vm0, %v1056_v56, 0.0 }
 0x4c9   :  { %v1058_v59 = vadd.f32 %v1057_v58, %v1054_v57 }
 0x4cb   :  { %1059 = vst [vmem:[%s1705_s7] sm:$0x1] %v1058_v59 }
 0x4cc   :  { %1264 = dma.done.wait [#allocation3], 512  }
 0x4cd   :  { %1265 = vsyncadd [#allocation3], 4294966784 }
 0x4ce   :  { %1081 = vsyncpa [#allocation3], 1 }

</bundles_post_ra>
